<compile_context>
chip_gen: v6e
topology: v6e:2x2x1
jax: 0.10.0
libtpu: 0.0.40
codegen_flags: <defaults>
</compile_context>

<pallas_src>
import jax
import jax.numpy as jnp
from jax import lax
from jax.experimental import pallas as pl
from jax.experimental.pallas import tpu as pltpu

STATE_DIM = 288
N_ACTIONS = 12
ACT_PAD = 16          # one-hot table zero-padded to a sublane-aligned 16 rows
HIDDEN = 256
OUT_DIM = 288


def _round_up(x, m):
    return ((x + m - 1) // m) * m


def fnet_kernel(state_ref, action_ref, w1s_ref, w1ab_ref, w2_ref, b2_ref,
                out_ref):
    # state_ref:  [TB, 288]  f32   (batch tile, pipelined HBM<->VMEM)
    # action_ref: [TB, 1]    i32   (batch tile, pipelined)
    # w1s_ref:    [288, 256] bf16  (W1^T rows for the state slice, resident)
    # w1ab_ref:   [16, 256]  f32   (W1^T rows for one-hot slice + b1, resident)
    # w2_ref:     [256, 288] bf16  (resident)
    # b2_ref:     [1, 288]   f32   (resident)
    # out_ref:    [TB, 288]  f32
    state = state_ref[...].astype(w1s_ref.dtype)             # bf16 MXU operand
    act = action_ref[...]                                     # [TB, 1] i32
    tb = state.shape[0]

    # state @ W1s  (bf16 MXU, f32 accumulation)
    h = jnp.dot(state, w1s_ref[...], preferred_element_type=jnp.float32)

    # cat(state, one_hot) @ W1 + b1 == state @ W1s + one_hot @ (W1a + b1),
    # since each one-hot row sums to exactly 1.  Build the one-hot on the fly
    # and run the tiny matmul on the idle MXU instead of a 12-way VPU
    # select/add chain over the [TB, 256] intermediate.
    ids = lax.broadcasted_iota(jnp.int32, (tb, ACT_PAD), 1)
    onehot = (ids == act).astype(jnp.float32)                 # [TB, 16]
    h = h + jnp.dot(onehot, w1ab_ref[...], preferred_element_type=jnp.float32)

    h = jnp.maximum(h, 0.0)                                    # ReLU

    y = jnp.dot(h.astype(w2_ref.dtype), w2_ref[...],
                preferred_element_type=jnp.float32) + b2_ref[...]
    out_ref[...] = y.astype(out_ref.dtype)


def fnet_forward(state, action, params, *, tile_b=2048,
                 compute_dtype=jnp.bfloat16):
    """state: [B, 288] f32, action: [B, 1] i32 -> [B, 288] f32."""
    w1t, b1, w2t, b2 = params
    w1s = w1t[:STATE_DIM].astype(compute_dtype)                # [288, 256]
    # One-hot rows of W1^T with b1 folded in, zero-padded to 16 rows so the
    # small contraction is sublane-aligned (rows 12..15 never match an action).
    w1ab = w1t[STATE_DIM:].astype(jnp.float32) + b1.astype(jnp.float32)[None, :]
    w1ab = jnp.pad(w1ab, ((0, ACT_PAD - N_ACTIONS), (0, 0)))   # [16, 256]
    w2c = w2t.astype(compute_dtype)                            # [256, 288]
    b2_2d = b2.reshape(1, OUT_DIM).astype(jnp.float32)

    B = state.shape[0]
    bp0 = _round_up(B, 8)
    tb = min(tile_b, bp0)
    if bp0 >= 16:
        # Guarantee >= 2 grid steps so the "parallel" batch axis keeps both
        # v7x TensorCores busy; negligible cost on single-TC v5e/v6e.
        tb = min(tb, _round_up(pl.cdiv(bp0, 2), 8))
    pad = (-B) % tb
    if pad:
        state = jnp.pad(state, ((0, pad), (0, 0)))
        action = jnp.pad(action, ((0, pad), (0, 0)))
    bp = B + pad
    grid = (bp // tb,)

    const = lambda i: (0, 0)   # weights: same block every step -> VMEM-resident
    # TODO(synk): if the producer/consumer contract allows bf16 state/output,
    # switch those dtypes here for ~25-50% less HBM traffic on this
    # memory-bound kernel (do NOT add a standalone astype pass).
    out = pl.pallas_call(
        fnet_kernel,
        out_shape=jax.ShapeDtypeStruct((bp, OUT_DIM), jnp.float32),
        grid=grid,
        in_specs=[
            pl.BlockSpec((tb, STATE_DIM), lambda i: (i, 0)),   # state tile
            pl.BlockSpec((tb, 1), lambda i: (i, 0)),           # action tile
            pl.BlockSpec((STATE_DIM, HIDDEN), const),          # w1s
            pl.BlockSpec((ACT_PAD, HIDDEN), const),            # w1a + b1
            pl.BlockSpec((HIDDEN, OUT_DIM), const),            # w2
            pl.BlockSpec((1, OUT_DIM), const),                 # b2
        ],
        out_specs=pl.BlockSpec((tb, OUT_DIM), lambda i: (i, 0)),
        compiler_params=pltpu.CompilerParams(
            dimension_semantics=("parallel",),          # megacore on v7x
            vmem_limit_bytes=32 * 1024 * 1024),         # tb=2048 -> ~15 MiB bufs
    )(state, action, w1s, w1ab, w2c, b2_2d)
    return out[:B]


def init_params(key):
    """Deterministic init matching nn.Linear(300,256) / nn.Linear(256,288).

    Weights are stored already transposed: W^T with shape [in, out].
    """
    k1, k2, k3, k4 = jax.random.split(key, 4)
    lim1 = 1.0 / jnp.sqrt(300.0)
    lim2 = 1.0 / jnp.sqrt(256.0)
    w1t = jax.random.uniform(k1, (300, HIDDEN), jnp.float32, -lim1, lim1)
    b1 = jax.random.uniform(k2, (HIDDEN,), jnp.float32, -lim1, lim1)
    w2t = jax.random.uniform(k3, (HIDDEN, OUT_DIM), jnp.float32, -lim2, lim2)
    b2 = jax.random.uniform(k4, (OUT_DIM,), jnp.float32, -lim2, lim2)
    return w1t, b1, w2t, b2


def fnet_reference(state, action, params, compute_dtype=jnp.bfloat16):
    """Pure-JAX reference of the PyTorch forward (same bf16 MXU precision)."""
    w1t, b1, w2t, b2 = params
    onehot = jax.nn.one_hot(action[:, 0], N_ACTIONS, dtype=jnp.float32)
    x = jnp.concatenate([state, onehot], axis=1)
    h = jnp.dot(x.astype(compute_dtype), w1t.astype(compute_dtype),
                preferred_element_type=jnp.float32) + b1
    h = jax.nn.relu(h)
    return jnp.dot(h.astype(compute_dtype), w2t.astype(compute_dtype),
                   preferred_element_type=jnp.float32) + b2


if __name__ == "__main__":
    key = jax.random.PRNGKey(0)
    kp, ks, ka = jax.random.split(key, 3)

    B = 250                     # exercises padding and the >=2-step grid cap
    params = init_params(kp)
    state = jax.random.normal(ks, (B, STATE_DIM), jnp.float32)
    action = jax.random.randint(ka, (B, 1), 0, N_ACTIONS, jnp.int32)

    out = jax.block_until_ready(fnet_forward(state, action, params))

    ref = fnet_reference(state, action, params)
    assert out.shape == (B, OUT_DIM)
    max_err = float(jnp.max(jnp.abs(out - ref)))
    assert jnp.allclose(out, ref, atol=2e-3, rtol=2e-3), max_err

    print("KERNEL_OK")
</pallas_src>

<mosaic_0001>
module attributes {stable_mosaic.version = 11 : i64} {
  func.func @fnet_kernel(%arg0: i32, %arg1: memref<128x288xf32, #tpu.memory_space<vmem>>, %arg2: memref<128x1xi32, #tpu.memory_space<vmem>>, %arg3: memref<288x256xbf16, #tpu.memory_space<vmem>>, %arg4: memref<16x256xf32, #tpu.memory_space<vmem>>, %arg5: memref<256x288xbf16, #tpu.memory_space<vmem>>, %arg6: memref<1x288xf32, #tpu.memory_space<vmem>>, %arg7: memref<128x288xf32, #tpu.memory_space<vmem>>) attributes {dimension_semantics = [#tpu.dimension_semantics<parallel>], iteration_bounds = array<i64: 2>, scalar_prefetch = 0 : i64, scratch_operands = 0 : i64, tpu.core_type = #tpu.core_type<tc>, window_params = [{transform_indices = @transform_0, window_bounds = array<i64: 128, 288>}, {transform_indices = @transform_1, window_bounds = array<i64: 128, 1>}, {pipeline_mode = #tpu.pipeline_mode<synchronous>, transform_indices = @transform_2, window_bounds = array<i64: 288, 256>}, {pipeline_mode = #tpu.pipeline_mode<synchronous>, transform_indices = @transform_3, window_bounds = array<i64: 16, 256>}, {pipeline_mode = #tpu.pipeline_mode<synchronous>, transform_indices = @transform_4, window_bounds = array<i64: 256, 288>}, {pipeline_mode = #tpu.pipeline_mode<synchronous>, transform_indices = @transform_5, window_bounds = array<i64: 1, 288>}, {transform_indices = @transform_6, window_bounds = array<i64: 128, 288>}]} {
    %c0 = arith.constant 0 : index
    %c0_0 = arith.constant 0 : index
    %0 = vector.load %arg1[%c0, %c0_0] : memref<128x288xf32, #tpu.memory_space<vmem>>, vector<128x288xf32>
    %1 = arith.truncf %0 : vector<128x288xf32> to vector<128x288xbf16>
    %c0_1 = arith.constant 0 : index
    %c0_2 = arith.constant 0 : index
    %2 = vector.load %arg2[%c0_1, %c0_2] : memref<128x1xi32, #tpu.memory_space<vmem>>, vector<128x1xi32>
    %c0_3 = arith.constant 0 : index
    %c0_4 = arith.constant 0 : index
    %3 = vector.load %arg3[%c0_3, %c0_4] : memref<288x256xbf16, #tpu.memory_space<vmem>>, vector<288x256xbf16>
    %cst = arith.constant dense<0.000000e+00> : vector<128x256xf32>
    %4 = tpu.matmul %1, %3, %cst {dimension_numbers = #tpu.dot_dimension_numbers<[1], [0], [0], [1], [0, 0, 1, 1], [], []>} : vector<128x288xbf16>, vector<288x256xbf16>, vector<128x256xf32> -> vector<128x256xf32>
    %5 = tpu.iota {dimensions = array<i32: 1>} : vector<128x16xi32>
    %6 = vector.broadcast %2 : vector<128x1xi32> to vector<128x16xi32>
    %7 = arith.cmpi eq, %5, %6 : vector<128x16xi32>
    %8 = arith.extui %7 : vector<128x16xi1> to vector<128x16xi32>
    %9 = arith.sitofp %8 : vector<128x16xi32> to vector<128x16xf32>
    %c0_5 = arith.constant 0 : index
    %c0_6 = arith.constant 0 : index
    %10 = vector.load %arg4[%c0_5, %c0_6] : memref<16x256xf32, #tpu.memory_space<vmem>>, vector<16x256xf32>
    %cst_7 = arith.constant dense<0.000000e+00> : vector<128x256xf32>
    %11 = tpu.matmul %9, %10, %cst_7 {dimension_numbers = #tpu.dot_dimension_numbers<[1], [0], [0], [1], [0, 0, 1, 1], [], []>} : vector<128x16xf32>, vector<16x256xf32>, vector<128x256xf32> -> vector<128x256xf32>
    %12 = arith.addf %4, %11 : vector<128x256xf32>
    %cst_8 = arith.constant 0.000000e+00 : f32
    %13 = vector.broadcast %cst_8 : f32 to vector<128x256xf32>
    %14 = arith.maximumf %12, %13 : vector<128x256xf32>
    %15 = arith.truncf %14 : vector<128x256xf32> to vector<128x256xbf16>
    %c0_9 = arith.constant 0 : index
    %c0_10 = arith.constant 0 : index
    %16 = vector.load %arg5[%c0_9, %c0_10] : memref<256x288xbf16, #tpu.memory_space<vmem>>, vector<256x288xbf16>
    %cst_11 = arith.constant dense<0.000000e+00> : vector<128x288xf32>
    %17 = tpu.matmul %15, %16, %cst_11 {dimension_numbers = #tpu.dot_dimension_numbers<[1], [0], [0], [1], [0, 0, 1, 1], [], []>} : vector<128x256xbf16>, vector<256x288xbf16>, vector<128x288xf32> -> vector<128x288xf32>
    %c0_12 = arith.constant 0 : index
    %c0_13 = arith.constant 0 : index
    %18 = vector.load %arg6[%c0_12, %c0_13] : memref<1x288xf32, #tpu.memory_space<vmem>>, vector<1x288xf32>
    %19 = vector.broadcast %18 : vector<1x288xf32> to vector<128x288xf32>
    %20 = arith.addf %17, %19 : vector<128x288xf32>
    %c0_14 = arith.constant 0 : index
    %c0_15 = arith.constant 0 : index
    %21 = vector.load %arg7[%c0_14, %c0_15] : memref<128x288xf32, #tpu.memory_space<vmem>>, vector<128x288xf32>
    tpu.vector_store %arg7[%c0_14, %c0_15], %20 {strides = array<i32>} : memref<128x288xf32, #tpu.memory_space<vmem>>, vector<128x288xf32>,
    return
  }
  func.func @transform_0(%arg0: i32) -> (i32, i32) {
    %c0_i32 = arith.constant 0 : i32
    %c0_i32_0 = arith.constant 0 : i32
    return %arg0, %c0_i32 : i32, i32
  }
  func.func @transform_1(%arg0: i32) -> (i32, i32) {
    %c0_i32 = arith.constant 0 : i32
    %c0_i32_0 = arith.constant 0 : i32
    return %arg0, %c0_i32 : i32, i32
  }
  func.func @transform_2(%arg0: i32) -> (i32, i32) {
    %c0_i32 = arith.constant 0 : i32
    %c0_i32_0 = arith.constant 0 : i32
    %c0_i32_1 = arith.constant 0 : i32
    return %c0_i32, %c0_i32_0 : i32, i32
  }
  func.func @transform_3(%arg0: i32) -> (i32, i32) {
    %c0_i32 = arith.constant 0 : i32
    %c0_i32_0 = arith.constant 0 : i32
    %c0_i32_1 = arith.constant 0 : i32
    return %c0_i32, %c0_i32_0 : i32, i32
  }
  func.func @transform_4(%arg0: i32) -> (i32, i32) {
    %c0_i32 = arith.constant 0 : i32
    %c0_i32_0 = arith.constant 0 : i32
    %c0_i32_1 = arith.constant 0 : i32
    return %c0_i32, %c0_i32_0 : i32, i32
  }
  func.func @transform_5(%arg0: i32) -> (i32, i32) {
    %c0_i32 = arith.constant 0 : i32
    %c0_i32_0 = arith.constant 0 : i32
    %c0_i32_1 = arith.constant 0 : i32
    return %c0_i32, %c0_i32_0 : i32, i32
  }
  func.func @transform_6(%arg0: i32) -> (i32, i32) {
    %c0_i32 = arith.constant 0 : i32
    %c0_i32_0 = arith.constant 0 : i32
    return %arg0, %c0_i32 : i32, i32
  }
}

</mosaic_0001>

<bundles_post_ra>
// kernel: tpu_custom_call.1
= control target key start
LH: loop header
LB: loop body
LE: loop exit
PB: predicated region body
PF: predicated region fallthrough
CT: control target
= control target key end

     0   :  { %s2240_s21 = smov 0   ;;  %s2935_s0 = inlined_call_operand.vmem [shape: f32[256,288], index: 0, kind: input, shape index: {}]   ;;  %s2936_s1 = inlined_call_operand.vmem [shape: s32[256,1], index: 1, kind: input, shape index: {}]   ;;  %s2937_s2 = inlined_call_operand.vmem [shape: bf16[288,256], index: 2, kind: input, shape index: {}]   ;;  %s2938_s3 = inlined_call_operand.vmem [shape: f32[16,256], index: 3, kind: input, shape index: {}]   ;;  %s2939_s4 = inlined_call_operand.vmem [shape: bf16[256,288], index: 4, kind: input, shape index: {}]   ;;  %s2940_s5 = inlined_call_operand.vmem [shape: f32[1,288], index: 5, kind: input, shape index: {}]   ;;  %s2941_s6 = inlined_call_operand.vmem [shape: f32[256,288], index: 6, kind: output, shape index: {}]  }
   0x1 LB: > { %s1863_s22 = sadd.s32 4294967295, %s2201_s21   ;;  %p1867_p0 = scmp.ge.s32.totalorder %s2201_s21, 1  ;;  %s2201_s21 = sphi %s2240_s21, %s16_s21  }
   0x2   : > { %p225_p1 = scmp.lt.s32.totalorder %s2201_s21, 3 }
   0x4   : > { %p226_p2 = pnand %p1867_p0, %p225_p1 }
   0x6   : > { %229 = sbr.rel (%p226_p2) target bundleno = 675 (0x2a3), region = 44 }
   0xb   : > { %s1868_s23 = sshll.u32 %s1863_s22, 4  ;;  %v2077_v0 = vld [vmem:[%s2937_s2 + $0x74] ss:$8 sps:$4 sm:$0xff]   ;;  %v2203_v1 = vmov 0   ;;  %v2079_v2 = vld [vmem:[%s2937_s2 + $0x70] ss:$8 sps:$4 sm:$0xff]  }
   0xc   : > { %2076 = vset.pattern.permute.xlu1 %v2203_v1  ;;  %2075 = vset.pattern.permute.xlu0 %v2203_v1  ;;  %p263_p3 = scmp.lt.s32.totalorder %s1868_s23, 31  ;;  %v2080_v3 = vld [vmem:[%s2937_s2 + $0x64] ss:$8 sps:$4 sm:$0xff]   ;;  %v2204_v4 = vmov 0.0   ;;  %v2082_v5 = vld [vmem:[%s2937_s2 + $0x60] ss:$8 sps:$4 sm:$0xff]  }
   0xd   : > { %924 = vmatprep.subr.bf16.mxu1 %v2077_v0  ;;  %622 = vmatprep.mubr.f32.mxu0 %v2204_v4  ;;  %v2083_v6 = vld [vmem:[%s2937_s2 + $0x54] ss:$8 sps:$4 sm:$0xff]   ;;  %v2085_v9 = vld [vmem:[%s2937_s2 + $0x50] ss:$8 sps:$4 sm:$0xff]   ;;  %v2086_v12 = vld [vmem:[%s2937_s2 + $0x44] ss:$8 sps:$4 sm:$0xff]  }
   0xe   : > { %s2955_s23 = smov (!%p263_p3, %s1868_s23), 31  ;;  %925 = vmatpush1.bf16.msra.mxu1 %v2079_v2  ;;  %v2088_v13 = vld [vmem:[%s2937_s2 + $0x40] ss:$8 sps:$4 sm:$0xff]   ;;  %v2089_v15 = vld [vmem:[%s2937_s2 + $0x34] ss:$8 sps:$4 sm:$0xff]   ;;  %vm509_vm0 = vcmask 130048  }
   0xf   : > { %926 = vmatprep.subr.bf16.mxu1 %v2080_v3  ;;  %s1871_s8 = sshll.u32 %s2955_s23, 3  ;;  %v2091_v18 = vld [vmem:[%s2937_s2 + $0x30] ss:$8 sps:$4 sm:$0xff]   ;;  %v2092_v20 = vld [vmem:[%s2937_s2 + $0x24] ss:$8 sps:$4 sm:$0xff]   ;;  %s2064_s30 = smul.u32 24, %s2955_s23 }
  0x10   : > { %s2272_s13 = scalar_lea.vmem %s2936_s1, %s1871_s8  ;;  %v2094_v22 = vld [vmem:[%s2937_s2 + $0x20] ss:$8 sps:$4 sm:$0xff]   ;;  %v2095_v24 = vld [vmem:[%s2937_s2 + $0x14] ss:$8 sps:$4 sm:$0xff]   ;;  %v2097_v26 = vld [vmem:[%s2937_s2 + $0x10] ss:$8 sps:$4 sm:$0xff]  }
  0x11   : > { %v357_v7 = vld [vmem:[%s2272_s13 + $0x10] sm:$0xff]  ;;  %v355_v8 = vld [vmem:[%s2272_s13] sm:$0xff]  ;;  %v358_v10 = vld [vmem:[%s2272_s13 + $0x18] sm:$0xff]  ;;  %s2328_s20 = scalar_lea.vmem %s2935_s0, %s2064_s30  ;;  %s2816_s27 = scalar_lea.vmem %s2941_s6, %s2064_s30 }
  0x12   : > { %927 = vmatpush1.bf16.msra.mxu1 %v2082_v5  ;;  %416 = vperm.xlu1 %2076, %v357_v7   ;;  %v356_v11 = vld [vmem:[%s2272_s13 + $0x8] sm:$0xff]  ;;  %v359_v16 = vld [vmem:[%s2272_s13 + $0x20] sm:$0xff]  ;;  %v362_v17 = vld [vmem:[%s2272_s13 + $0x38] sm:$0xff] }
  0x13   : > { %410 = vperm.xlu0 %2075, %v355_v8   ;;  %928 = vmatprep.subr.bf16.mxu1 %v2083_v6  ;;  %v360_v14 = vld [vmem:[%s2272_s13 + $0x28] sm:$0xff]  ;;  %v361_v19 = vld [vmem:[%s2272_s13 + $0x30] sm:$0xff]  ;;  %v363_v23 = vld [vmem:[%s2272_s13 + $0x40] sm:$0xff] }
  0x14   : > { %v364_v21 = vld [vmem:[%s2272_s13 + $0x48] sm:$0xff]  ;;  %v366_v25 = vld [vmem:[%s2272_s13 + $0x58] sm:$0xff]  ;;  %v365_v27 = vld [vmem:[%s2272_s13 + $0x50] sm:$0xff] }
  0x15   : > { %v2098_v28 = vld [vmem:[%s2937_s2 + $0x4] ss:$8 sps:$4 sm:$0xff]   ;;  %v508_v29 = vld [vmem:[%s2938_s3 + $0x18] sm:$0xff]  ;;  %v507_v30 = vld [vmem:[%s2938_s3 + $0x10] sm:$0xff] }
  0x16   : > { %929 = vmatpush1.bf16.msra.mxu1 %v2085_v9  ;;  %419 = vperm.xlu1 %2076, %v358_v10   ;;  %v368_v31 = vld [vmem:[%s2272_s13 + $0x68] sm:$0xff]  ;;  %v367_v32 = vld [vmem:[%s2272_s13 + $0x60] sm:$0xff]  ;;  %v2101_v38 = vld [vmem:[%s2937_s2 + $0xf4] ss:$8 sps:$4 sm:$0xff]  }
  0x17   : > { %413 = vperm.xlu0 %2075, %v356_v11   ;;  %930 = vmatprep.subr.bf16.mxu1 %v2086_v12  ;;  %v2100_v33 = vld [vmem:[%s2937_s2] ss:$8 sps:$4 sm:$0xff]   ;;  %v2127_v40 = vld [vmem:[%s2937_s2 + $0x114] ss:$8 sps:$4 sm:$0xff]   ;;  %v2103_v41 = vld [vmem:[%s2937_s2 + $0xf0] ss:$8 sps:$4 sm:$0xff]  }
  0x18   : > { %586 = vmatprep.subr.mxu0 %v508_v29  ;;  %v506_v34 = vld [vmem:[%s2938_s3 + $0x8] sm:$0xff]  ;;  %v505_v35 = vld [vmem:[%s2938_s3] sm:$0xff]  ;;  %v370_v42 = vld [vmem:[%s2272_s13 + $0x78] sm:$0xff] }
  0x19   : > { %587 = vmatpush1.msra.mxu0 %v507_v30  ;;  %v284_v36 = vld [vmem:[%s2328_s20 + $0x8] sm:$0xff]  ;;  %v287_v37 = vld [vmem:[%s2328_s20 + $0x20] sm:$0xff]  ;;  %v369_v43 = vld [vmem:[%s2272_s13 + $0x70] sm:$0xff] }
  0x1a   : > { %931 = vmatpush1.bf16.msra.mxu1 %v2088_v13  ;;  %425 = vperm.xlu1 %2076, %v360_v14   ;;  %v332_v39 = vpack.c.bf16 %v287_v37, %v284_v36  ;;  %v2104_v44 = vld [vmem:[%s2937_s2 + $0xe4] ss:$8 sps:$4 sm:$0xff]   ;;  %v2106_v45 = vld [vmem:[%s2937_s2 + $0xe0] ss:$8 sps:$4 sm:$0xff]   ;;  %v2107_v46 = vld [vmem:[%s2937_s2 + $0xd4] ss:$8 sps:$4 sm:$0xff]  }
  0x1b   : > { %422 = vperm.xlu0 %2075, %v359_v16   ;;  %932 = vmatprep.subr.bf16.mxu1 %v2089_v15  ;;  %v2109_v47 = vld [vmem:[%s2937_s2 + $0xd0] ss:$8 sps:$4 sm:$0xff]   ;;  %v2110_v48 = vld [vmem:[%s2937_s2 + $0xc4] ss:$8 sps:$4 sm:$0xff]   ;;  %v2112_v49 = vld [vmem:[%s2937_s2 + $0xc0] ss:$8 sps:$4 sm:$0xff]  }
  0x1c   : > { %588 = vmatprep.subr.mxu0 %v506_v34  ;;  %956 = vmatprep.mubr.bf16.mxu1 %v332_v39  ;;  %v2113_v50 = vld [vmem:[%s2937_s2 + $0xb4] ss:$8 sps:$4 sm:$0xff]   ;;  %v2115_v51 = vld [vmem:[%s2937_s2 + $0xb0] ss:$8 sps:$4 sm:$0xff]   ;;  %v2116_v52 = vld [vmem:[%s2937_s2 + $0xa4] ss:$8 sps:$4 sm:$0xff]  }
  0x1d   : > { %589 = vmatpush1.msra.mxu0 %v505_v35  ;;  %v2118_v53 = vld [vmem:[%s2937_s2 + $0xa0] ss:$8 sps:$4 sm:$0xff]   ;;  %v2119_v54 = vld [vmem:[%s2937_s2 + $0x94] ss:$8 sps:$4 sm:$0xff]   ;;  %v2121_v55 = vld [vmem:[%s2937_s2 + $0x90] ss:$8 sps:$4 sm:$0xff]  }
  0x1e   : > { %933 = vmatpush1.bf16.msra.mxu1 %v2091_v18  ;;  %431 = vperm.xlu1 %2076, %v362_v17   ;;  %v2122_v56 = vld [vmem:[%s2937_s2 + $0x84] ss:$8 sps:$4 sm:$0xff]   ;;  %v2124_v57 = vld [vmem:[%s2937_s2 + $0x80] ss:$8 sps:$4 sm:$0xff]   ;;  %v286_v59 = vld [vmem:[%s2328_s20 + $0x18] sm:$0xff] }
  0x1f   : > { %428 = vperm.xlu0 %2075, %v361_v19   ;;  %934 = vmatprep.subr.bf16.mxu1 %v2092_v20  ;;  %v283_v58 = vld [vmem:[%s2328_s20] sm:$0xff]  ;;  %v290_v60 = vld [vmem:[%s2328_s20 + $0x38] sm:$0xff]  ;;  %v293_v61 = vld [vmem:[%s2328_s20 + $0x50] sm:$0xff] }
  0x20   : > { %1049 = vmatprep.subr.bf16.mxu0 %v2127_v40  ;;  %v331_v62 = vpack.c.bf16 %v286_v59, %v283_v58  ;;  %v335_v63 = vpack.c.bf16 %v293_v61, %v290_v60  ;;  %v289_v0 = vld [vmem:[%s2328_s20 + $0x30] sm:$0xff]  ;;  %v292_v2 = vld [vmem:[%s2328_s20 + $0x48] sm:$0xff]  ;;  %v299_v5 = vld [vmem:[%s2328_s20 + $0x80] sm:$0xff] }
  0x21   : > { %v296_v3 = vld [vmem:[%s2328_s20 + $0x68] sm:$0xff]  ;;  %v334_v6 = vpack.c.bf16 %v292_v2, %v289_v0  ;;  %v295_v8 = vld [vmem:[%s2328_s20 + $0x60] sm:$0xff]  ;;  %v298_v9 = vld [vmem:[%s2328_s20 + $0x78] sm:$0xff] }
  0x22   : > { %935 = vmatpush1.bf16.msra.mxu1 %v2094_v22  ;;  %437 = vperm.xlu1 %2076, %v364_v21   ;;  %v338_v7 = vpack.c.bf16 %v299_v5, %v296_v3  ;;  %v302_v10 = vld [vmem:[%s2328_s20 + $0x98] sm:$0xff]  ;;  %v305_v11 = vld [vmem:[%s2328_s20 + $0xb0] sm:$0xff]  ;;  %v337_v12 = vpack.c.bf16 %v298_v9, %v295_v8  ;;  %v304_v15 = vld [vmem:[%s2328_s20 + $0xa8] sm:$0xff] }
  0x23   : > { %434 = vperm.xlu0 %2075, %v363_v23   ;;  %936 = vmatprep.subr.bf16.mxu1 %v2095_v24  ;;  %v341_v13 = vpack.c.bf16 %v305_v11, %v302_v10  ;;  %v301_v14 = vld [vmem:[%s2328_s20 + $0x90] sm:$0xff]  ;;  %v308_v16 = vld [vmem:[%s2328_s20 + $0xc8] sm:$0xff]  ;;  %v311_v17 = vld [vmem:[%s2328_s20 + $0xe0] sm:$0xff] }
  0x24   : > { %v340_v18 = vpack.c.bf16 %v304_v15, %v301_v14  ;;  %v344_v19 = vpack.c.bf16 %v311_v17, %v308_v16  ;;  %v307_v20 = vld [vmem:[%s2328_s20 + $0xc0] sm:$0xff]  ;;  %v310_v21 = vld [vmem:[%s2328_s20 + $0xd8] sm:$0xff]  ;;  %v317_v23 = vld [vmem:[%s2328_s20 + $0x110] sm:$0xff] }
  0x25   : > { %v314_v22 = vld [vmem:[%s2328_s20 + $0xf8] sm:$0xff]  ;;  %v343_v24 = vpack.c.bf16 %v310_v21, %v307_v20  ;;  %v323_v29 = vld [vmem:[%s2328_s20 + $0x140] sm:$0xff]  ;;  %v329_v35 = vld [vmem:[%s2328_s20 + $0x170] sm:$0xff] }
  0x26   : > { %937 = vmatpush1.bf16.msra.mxu1 %v2097_v26  ;;  %443 = vperm.xlu1 %2076, %v366_v25   ;;  %v347_v25 = vpack.c.bf16 %v317_v23, %v314_v22  ;;  %v313_v26 = vld [vmem:[%s2328_s20 + $0xf0] sm:$0xff]  ;;  %v326_v34 = vld [vmem:[%s2328_s20 + $0x158] sm:$0xff]  ;;  %v328_v39 = vld [vmem:[%s2328_s20 + $0x168] sm:$0xff] }
  0x27   : > { %440 = vperm.xlu0 %2075, %v365_v27   ;;  %938 = vmatprep.subr.bf16.mxu1 %v2098_v28  ;;  %v316_v27 = vld [vmem:[%s2328_s20 + $0x108] sm:$0xff]  ;;  %v353_v37 = vpack.c.bf16 %v329_v35, %v326_v34  ;;  %v285_v15 = vld [vmem:[%s2328_s20 + $0x10] sm:$0xff]  ;;  %v294_v20 = vld [vmem:[%s2328_s20 + $0x58] sm:$0xff] }
  0x28   : > { %v320_v28 = vld [vmem:[%s2328_s20 + $0x128] sm:$0xff]  ;;  %v346_v30 = vpack.c.bf16 %v316_v27, %v313_v26  ;;  %v2135_v27 = vld [vmem:[%s2939_s4 + $0xb0] ss:$12 sps:$4 sm:$0xff]   ;;  %v2139_v34 = vld [vmem:[%s2939_s4 + $0x158] ss:$12 sps:$4 sm:$0xff]  }
  0x29   : > { %v288_v16 = vld [vmem:[%s2328_s20 + $0x28] sm:$0xff]  ;;  %v2140_v35 = vld [vmem:[%s2939_s4 + $0x78] ss:$12 sps:$4 sm:$0xff]  }
  0x2a   : > { %939 = vmatpush1.bf16.msra.mxu1 %v2100_v33  ;;  %449 = vperm.xlu1 %2076, %v368_v31   ;;  %v350_v31 = vpack.c.bf16 %v323_v29, %v320_v28  ;;  %v322_v33 = vld [vmem:[%s2328_s20 + $0x138] sm:$0xff]  ;;  %v300_v22 = vld [vmem:[%s2328_s20 + $0x88] sm:$0xff]  ;;  %v2138_v28 = vld [vmem:[%s2939_s4 + $0x94] ss:$12 sps:$4 sm:$0xff]  }
  0x2b   : > { %446 = vperm.xlu0 %2075, %v367_v32   ;;  %940 = vmatprep.subr.bf16.mxu1 %v2101_v38  ;;  %v319_v32 = vld [vmem:[%s2328_s20 + $0x120] sm:$0xff]  ;;  %v325_v38 = vld [vmem:[%s2328_s20 + $0x150] sm:$0xff] }
  0x2c   : > { %v349_v36 = vpack.c.bf16 %v322_v33, %v319_v32  ;;  %v352_v40 = vpack.c.bf16 %v328_v39, %v325_v38  ;;  %v2132_v26 = vld [vmem:[%s2939_s4 + $0xa8] ss:$12 sps:$4 sm:$0xff]   ;;  %v303_v29 = vld [vmem:[%s2328_s20 + $0xa0] sm:$0xff] }
  0x2d   : > { %v2142_v33 = vld [vmem:[%s2939_s4 + $0x7c] ss:$12 sps:$4 sm:$0xff]   ;;  %v309_v38 = vld [vmem:[%s2328_s20 + $0xd0] sm:$0xff] }
  0x2e   : > { %941 = vmatpush2.bf16.msra.mxu1 %v2103_v41  ;;  %455 = vperm.xlu1 %2076, %v370_v42   ;;  %v2942_v41 = vlaneseq  ;;  %v312_v39 = vld [vmem:[%s2328_s20 + $0xe8] sm:$0xff] }
  0x2f   : > { %452 = vperm.xlu0 %2075, %v369_v43   ;;  %942 = vmatprep.subr.bf16.mxu1 %v2104_v44  ;;  %v2125_v44 = vld [vmem:[%s2937_s2 + $0x110] ss:$8 sps:$4 sm:$0xff]  }
  0x30   : > { %v2427_v42 = vand.u32 127, %v2942_v41 }
  0x32   : > { %943 = vmatpush2.bf16.msra.mxu1 %v2106_v45  ;;  %v2130_v45 = vld [vmem:[%s2937_s2 + $0x104] ss:$8 sps:$4 sm:$0xff]  }
  0x33   : > { %944 = vmatprep.subr.bf16.mxu1 %v2107_v46 }
  0x36   : > { %945 = vmatpush2.bf16.msra.mxu1 %v2109_v47 }
  0x37   : > { %946 = vmatprep.subr.bf16.mxu1 %v2110_v48 }
  0x3a   : > { %947 = vmatpush2.bf16.msra.mxu1 %v2112_v49  ;;  %v2128_v49 = vld [vmem:[%s2937_s2 + $0x100] ss:$8 sps:$4 sm:$0xff]  }
  0x3b   : > { %948 = vmatprep.subr.bf16.mxu1 %v2113_v50 }
  0x3e   : > { %949 = vmatpush2.bf16.msra.mxu1 %v2115_v51 }
  0x3f   : > { %950 = vmatprep.subr.bf16.mxu1 %v2116_v52 }
  0x42   : > { %951 = vmatpush2.bf16.msra.mxu1 %v2118_v53 }
  0x43   : > { %952 = vmatprep.subr.bf16.mxu1 %v2119_v54 }
  0x46   : > { %953 = vmatpush2.bf16.msra.mxu1 %v2121_v55 }
  0x47   : > { %954 = vmatprep.subr.bf16.mxu1 %v2122_v56 }
  0x4a   : > { %955 = vmatpush2.bf16.msra.mxu1 %v2124_v57 }
  0x4d   : > { %957 = vmatmul.mubr.bf16.vlgmr.msra.gmra.mxu1 %v331_v62 }
  0x4e   : > { %966 = vmatprep.mubr.bf16.mxu1 %v335_v63 }
  0x55   : > { %967 = vmatmul.mubr.bf16.gmra.mxu1 %v334_v6 }
  0x56   : > { %976 = vmatprep.mubr.bf16.mxu1 %v338_v7 }
  0x5d   : > { %977 = vmatmul.mubr.bf16.gmra.mxu1 %v337_v12 }
  0x5e   : > { %986 = vmatprep.mubr.bf16.mxu1 %v341_v13 }
  0x65   : > { %987 = vmatmul.mubr.bf16.gmra.mxu1 %v340_v18  ;;  %v333_v18 = vpack.c.bf16 %v288_v16, %v285_v15  ;;  %v2180_v15 = vld [vmem:[%s2939_s4 + $0x108] ss:$12 sps:$4 sm:$0xff]   ;;  %v2183_v16 = vld [vmem:[%s2939_s4 + $0x20] ss:$12 sps:$4 sm:$0xff]  }
  0x66   : > { %996 = vmatprep.mubr.bf16.mxu1 %v344_v19  ;;  %v291_v19 = vld [vmem:[%s2328_s20 + $0x40] sm:$0xff] }
  0x67   : > { %v336_v21 = vpack.c.bf16 %v294_v20, %v291_v19  ;;  %v2190_v19 = vld [vmem:[%s2939_s4 + $0xdc] ss:$12 sps:$4 sm:$0xff]   ;;  %v2188_v20 = vld [vmem:[%s2939_s4 + $0xd8] ss:$12 sps:$4 sm:$0xff]  }
  0x6d   : > { %997 = vmatmul.mubr.bf16.gmra.mxu1 %v343_v24  ;;  %v2134_v24 = vld [vmem:[%s2939_s4 + $0xac] ss:$12 sps:$4 sm:$0xff]  }
  0x6e   : > { %1006 = vmatprep.mubr.bf16.mxu1 %v347_v25  ;;  %v2131_v25 = vld [vmem:[%s2939_s4 + $0x170] ss:$12 sps:$4 sm:$0xff]   ;;  %1535 = vmatprep.subr.bf16.mxu1 %v2134_v24 }
  0x6f   : > { %1536 = vmatpush1.bf16.msra.mxu1 %v2132_v26 }
  0x70   : > { %1537 = vmatprep.subr.bf16.mxu1 %v2138_v28 }
  0x75   : > { %1007 = vmatmul.mubr.bf16.gmra.mxu1 %v346_v30  ;;  %v306_v30 = vld [vmem:[%s2328_s20 + $0xb8] sm:$0xff] }
  0x76   : > { %1016 = vmatprep.mubr.bf16.mxu1 %v350_v31  ;;  %v2136_v31 = vld [vmem:[%s2939_s4 + $0x90] ss:$12 sps:$4 sm:$0xff]   ;;  %v342_v32 = vpack.c.bf16 %v306_v30, %v303_v29 }
  0x77   : > { %1538 = vmatpush1.bf16.msra.mxu1 %v2136_v31 }
  0x78   : > { %1539 = vmatprep.subr.bf16.mxu1 %v2142_v33 }
  0x7b   : > { %1540 = vmatpush1.bf16.msra.mxu1 %v2140_v35 }
  0x7d   : > { %1017 = vmatmul.mubr.bf16.gmra.mxu1 %v349_v36  ;;  %v2143_v36 = vld [vmem:[%s2939_s4 + $0x98] ss:$12 sps:$4 sm:$0xff]  }
  0x7e   : > { %1026 = vmatprep.mubr.bf16.mxu1 %v353_v37  ;;  %v2146_v37 = vld [vmem:[%s2939_s4 + $0x64] ss:$12 sps:$4 sm:$0xff]  }
  0x7f   : > { %1541 = vmatprep.subr.bf16.mxu1 %v2146_v37 }
  0x85   : > { %1027 = vmatmul.mubr.bf16.gmra.mxu1 %v352_v40  ;;  %v2144_v40 = vld [vmem:[%s2939_s4 + $0x60] ss:$12 sps:$4 sm:$0xff]  }
  0x86   : > { %1542 = vmatpush1.bf16.msra.mxu1 %v2144_v40 }
  0x8d   : > { %v417_v47 = vpop.permute.xlu1 %416 }
  0x8e   : > { %v411_v43 = vpop.permute.xlu0 %410  ;;  %vm459_vm2 = vcmp.eq.s32.totalorder %v2427_v42, %v417_v47  ;;  %v2154_v47 = vld [vmem:[%s2939_s4 + $0x34] ss:$12 sps:$4 sm:$0xff]  }
  0x8f   : > { %vm457_vm1 = vcmp.eq.s32.totalorder %v2427_v42, %v411_v43  ;;  %v1876_v51 = vsel %vm459_vm2, 1.0, %v2204_v4  ;;  %vm899_vm2 = vcmask 261120   ;;  %v2150_v43 = vld [vmem:[%s2939_s4 + $0x4c] ss:$12 sps:$4 sm:$0xff]  }
  0x90   : > { %v1874_v46 = vsel %vm457_vm1, 1.0, %v2204_v4  ;;  %1543 = vmatprep.subr.bf16.mxu1 %v2150_v43 }
  0x91   : > { %1890 = vmatmul.mubr.msk.f32.vlgmr.msra.gmra.mxu0 %vm509_vm0, %v1874_v46  ;;  %v420_v52 = vpop.permute.xlu1 %419  ;;  %v2151_v46 = vld [vmem:[%s2939_s4 + $0x80] ss:$12 sps:$4 sm:$0xff]  }
  0x92   : > { %1050 = vmatpush1.bf16.msra.mxu0 %v2125_v44  ;;  %v414_v48 = vpop.permute.xlu0 %413  ;;  %628 = vmatprep.mubr.f32.mxu0 %v2204_v4  ;;  %vm460_vm4 = vcmp.eq.s32.totalorder %v2427_v42, %v420_v52  ;;  %v2147_v44 = vld [vmem:[%s2939_s4 + $0x140] ss:$12 sps:$4 sm:$0xff]   ;;  %v2158_v52 = vld [vmem:[%s2939_s4 + $0x1c] ss:$12 sps:$4 sm:$0xff]  }
  0x93   : > { %vm458_vm3 = vcmp.eq.s32.totalorder %v2427_v42, %v414_v48  ;;  %1051 = vmatprep.subr.bf16.mxu0 %v2130_v45  ;;  %v1877_v54 = vsel %vm460_vm4, 1.0, %v2204_v4  ;;  %v2148_v45 = vld [vmem:[%s2939_s4 + $0x48] ss:$12 sps:$4 sm:$0xff]   ;;  %v315_v48 = vld [vmem:[%s2328_s20 + $0x100] sm:$0xff] }
  0x94   : > { %v1875_v50 = vsel %vm458_vm3, 1.0, %v2204_v4  ;;  %1544 = vmatpush1.bf16.msra.mxu1 %v2148_v45 }
  0x95   : > { %1891 = vmatmul.mubr.msk.f32.gmra.mxu0 %vm509_vm0, %v1875_v50  ;;  %v426_v55 = vpop.permute.xlu1 %425  ;;  %v2152_v50 = vld [vmem:[%s2939_s4 + $0x30] ss:$12 sps:$4 sm:$0xff]   ;;  %1545 = vmatprep.subr.bf16.mxu1 %v2154_v47 }
  0x96   : > { %634 = vmatprep.mubr.f32.mxu0 %v2204_v4  ;;  %1052 = vmatpush1.bf16.msra.mxu0 %v2128_v49  ;;  %v423_v53 = vpop.permute.xlu0 %422  ;;  %vm462_vm6 = vcmp.eq.s32.totalorder %v2427_v42, %v426_v55  ;;  %v318_v49 = vld [vmem:[%s2328_s20 + $0x118] sm:$0xff]  ;;  %v2159_v55 = vld [vmem:[%s2939_s4 + $0x68] ss:$12 sps:$4 sm:$0xff]  }
  0x97   : > { %vm461_vm5 = vcmp.eq.s32.totalorder %v2427_v42, %v423_v53  ;;  %v1879_v58 = vsel %vm462_vm6, 1.0, %v2204_v4  ;;  %2000 = vmatprep.subr.bf16.mxu0 %v2131_v25  ;;  %v2155_v53 = vld [vmem:[%s2939_s4 + $0x128] ss:$12 sps:$4 sm:$0xff]  }
  0x98   : > { %v1878_v56 = vsel %vm461_vm5, 1.0, %v2204_v4  ;;  %1546 = vmatpush1.bf16.msra.mxu1 %v2152_v50 }
  0x99   : > { %1892 = vmatmul.mubr.msk.f32.gmra.mxu0 %vm509_vm0, %v1876_v51  ;;  %v432_v59 = vpop.permute.xlu1 %431  ;;  %v348_v51 = vpack.c.bf16 %v318_v49, %v315_v48  ;;  %1547 = vmatprep.subr.bf16.mxu1 %v2158_v52 }
  0x9a   : > { %640 = vmatprep.mubr.f32.mxu0 %v2204_v4  ;;  %v429_v57 = vpop.permute.xlu0 %428  ;;  %vm464_vm8 = vcmp.eq.s32.totalorder %v2427_v42, %v432_v59  ;;  %v2160_v59 = vld [vmem:[%s2939_s4] ss:$12 sps:$4 sm:$0xff]  }
  0x9b   : > { %vm463_vm7 = vcmp.eq.s32.totalorder %v2427_v42, %v429_v57  ;;  %v1881_v62 = vsel %vm464_vm8, 1.0, %v2204_v4  ;;  %v321_v57 = vld [vmem:[%s2328_s20 + $0x130] sm:$0xff] }
  0x9c   : > { %v1880_v60 = vsel %vm463_vm7, 1.0, %v2204_v4 }
  0x9d   : > { %1893 = vmatmul.mubr.msk.f32.gmra.mxu0 %vm509_vm0, %v1877_v54  ;;  %v438_v63 = vpop.permute.xlu1 %437  ;;  %v2156_v54 = vld [vmem:[%s2939_s4 + $0x18] ss:$12 sps:$4 sm:$0xff]  }
  0x9e   : > { %646 = vmatprep.mubr.f32.mxu0 %v2204_v4  ;;  %v435_v61 = vpop.permute.xlu0 %434  ;;  %vm466_vm10 = vcmp.eq.s32.totalorder %v2427_v42, %v438_v63  ;;  %1548 = vmatpush1.bf16.msra.mxu1 %v2156_v54  ;;  %v2164_v63 = vld [vmem:[%s2939_s4 + $0x168] ss:$12 sps:$4 sm:$0xff]  }
  0x9f   : > { %vm465_vm9 = vcmp.eq.s32.totalorder %v2427_v42, %v435_v61  ;;  %v1883_v3 = vsel %vm466_vm10, 1.0, %v2204_v4  ;;  %v2166_v61 = vld [vmem:[%s2939_s4 + $0x16c] ss:$12 sps:$4 sm:$0xff]  }
  0xa0   : > { %v1882_v0 = vsel %vm465_vm9, 1.0, %v2204_v4 }
  0xa1   : > { %1894 = vmatmul.mubr.msk.f32.gmra.mxu0 %vm509_vm0, %v1878_v56  ;;  %v444_v5 = vpop.permute.xlu1 %443  ;;  %v2162_v56 = vld [vmem:[%s2939_s4 + $0x4] ss:$12 sps:$4 sm:$0xff]  }
  0xa2   : > { %652 = vmatprep.mubr.f32.mxu0 %v2204_v4  ;;  %v441_v2 = vpop.permute.xlu0 %440  ;;  %vm468_vm12 = vcmp.eq.s32.totalorder %v2427_v42, %v444_v5  ;;  %1549 = vmatprep.subr.bf16.mxu1 %v2162_v56  ;;  %v330_v5 = vld [vmem:[%s2328_s20 + $0x178] sm:$0xff] }
  0xa3   : > { %vm467_vm11 = vcmp.eq.s32.totalorder %v2427_v42, %v441_v2  ;;  %v1885_v8 = vsel %vm468_vm12, 1.0, %v2204_v4  ;;  %1550 = vmatpush1.bf16.msra.mxu1 %v2160_v59  ;;  %v2170_v2 = vld [vmem:[%s2939_s4 + $0x154] ss:$12 sps:$4 sm:$0xff]  }
  0xa4   : > { %v1884_v6 = vsel %vm467_vm11, 1.0, %v2204_v4  ;;  %1551 = vmatprep.subr.bf16.mxu1 %v2166_v61 }
  0xa5   : > { %1895 = vmatmul.mubr.msk.f32.gmra.mxu0 %vm509_vm0, %v1879_v58  ;;  %v450_v9 = vpop.permute.xlu1 %449  ;;  %v324_v58 = vld [vmem:[%s2328_s20 + $0x148] sm:$0xff] }
  0xa6   : > { %658 = vmatprep.mubr.f32.mxu0 %v2204_v4  ;;  %v447_v7 = vpop.permute.xlu0 %446  ;;  %vm470_vm14 = vcmp.eq.s32.totalorder %v2427_v42, %v450_v9  ;;  %v2171_v9 = vld [vmem:[%s2939_s4 + $0xf8] ss:$12 sps:$4 sm:$0xff]  }
  0xa7   : > { %vm469_vm13 = vcmp.eq.s32.totalorder %v2427_v42, %v447_v7  ;;  %v1887_v12 = vsel %vm470_vm14, 1.0, %v2204_v4  ;;  %1552 = vmatpush2.bf16.msra.mxu1 %v2164_v63 }
  0xa8   : > { %v1886_v10 = vsel %vm469_vm13, 1.0, %v2204_v4  ;;  %1553 = vmatprep.subr.bf16.mxu1 %v2170_v2 }
  0xa9   : > { %1896 = vmatmul.mubr.msk.f32.gmra.mxu0 %vm509_vm0, %v1880_v60  ;;  %v456_v13 = vpop.permute.xlu1 %455  ;;  %v351_v60 = vpack.c.bf16 %v324_v58, %v321_v57 }
  0xaa   : > { %664 = vmatprep.mubr.f32.mxu0 %v2204_v4  ;;  %v453_v11 = vpop.permute.xlu0 %452  ;;  %vm472_vm1 = vcmp.eq.s32.totalorder %v2427_v42, %v456_v13  ;;  %v2182_v13 = vld [vmem:[%s2939_s4 + $0x10c] ss:$12 sps:$4 sm:$0xff]  }
  0xab   : > { %vm471_vm15 = vcmp.eq.s32.totalorder %v2427_v42, %v453_v11  ;;  %v1889_v17 = vsel %vm472_vm1, 1.0, %v2204_v4  ;;  %v345_v42 = vpack.c.bf16 %v312_v39, %v309_v38  ;;  %v2178_v11 = vld [vmem:[%s2939_s4 + $0x124] ss:$12 sps:$4 sm:$0xff]  }
  0xac   : > { %v1888_v14 = vsel %vm471_vm15, 1.0, %v2204_v4 }
  0xad   : > { %1897 = vmatmul.mubr.msk.f32.gmra.mxu0 %vm509_vm0, %v1881_v62  ;;  %v2163_v62 = vld [vmem:[%s2939_s4 + $0x110] ss:$12 sps:$4 sm:$0xff]  }
  0xae   : > { %670 = vmatprep.mubr.f32.mxu0 %v2204_v4 }
  0xb1   : > { %1898 = vmatmul.mubr.msk.f32.gmra.mxu0 %vm509_vm0, %v1882_v0  ;;  %v2167_v0 = vld [vmem:[%s2939_s4 + $0x50] ss:$12 sps:$4 sm:$0xff]  }
  0xb2   : > { %676 = vmatprep.mubr.f32.mxu0 %v2204_v4 }
  0xb5   : > { %1899 = vmatmul.mubr.msk.f32.gmra.mxu0 %vm509_vm0, %v1883_v3  ;;  %v327_v3 = vld [vmem:[%s2328_s20 + $0x160] sm:$0xff] }
  0xb6   : > { %682 = vmatprep.mubr.f32.mxu0 %v2204_v4  ;;  %v354_v7 = vpack.c.bf16 %v330_v5, %v327_v3 }
  0xb9   : > { %1900 = vmatmul.mubr.msk.f32.gmra.mxu0 %vm509_vm0, %v1884_v6  ;;  %v2168_v6 = vld [vmem:[%s2939_s4 + $0x150] ss:$12 sps:$4 sm:$0xff]  }
  0xba   : > { %688 = vmatprep.mubr.f32.mxu0 %v2204_v4  ;;  %1554 = vmatpush2.bf16.msra.mxu1 %v2168_v6 }
  0xbd   : > { %1901 = vmatmul.mubr.msk.f32.gmra.mxu0 %vm509_vm0, %v1885_v8  ;;  %v2174_v8 = vld [vmem:[%s2939_s4 + $0x13c] ss:$12 sps:$4 sm:$0xff]  }
  0xbe   : > { %694 = vmatprep.mubr.f32.mxu0 %v2204_v4  ;;  %1555 = vmatprep.subr.bf16.mxu1 %v2174_v8 }
  0xc1   : > { %1902 = vmatmul.mubr.msk.f32.gmra.mxu0 %vm509_vm0, %v1886_v10  ;;  %v2175_v10 = vld [vmem:[%s2939_s4 + $0x38] ss:$12 sps:$4 sm:$0xff]  }
  0xc2   : > { %700 = vmatprep.mubr.f32.mxu0 %v2204_v4 }
  0xc5   : > { %1903 = vmatmul.mubr.msk.f32.gmra.mxu0 %vm509_vm0, %v1887_v12  ;;  %v2176_v12 = vld [vmem:[%s2939_s4 + $0x120] ss:$12 sps:$4 sm:$0xff]  }
  0xc6   : > { %706 = vmatprep.mubr.f32.mxu0 %v2204_v4 }
  0xc9   : > { %1904 = vmatmul.mubr.msk.f32.gmra.mxu0 %vm509_vm0, %v1888_v14  ;;  %v2179_v14 = vld [vmem:[%s2939_s4 + $0xe0] ss:$12 sps:$4 sm:$0xff]  }
  0xca   : > { %712 = vmatprep.mubr.f32.mxu0 %v2204_v4  ;;  %v297_v4 = vld [vmem:[%s2328_s20 + $0x70] sm:$0xff] }
  0xcb   : > { %v339_v23 = vpack.c.bf16 %v300_v22, %v297_v4  ;;  %v2194_v4 = vld [vmem:[%s2939_s4 + $0xc4] ss:$12 sps:$4 sm:$0xff]   ;;  %v2191_v22 = vld [vmem:[%s2939_s4 + $0x8] ss:$12 sps:$4 sm:$0xff]  }
  0xcd   : > { %1905 = vmatmul.mubr.msk.f32.gmra.mxu0 %vm509_vm0, %v1889_v17  ;;  %v2186_v17 = vld [vmem:[%s2939_s4 + $0xf4] ss:$12 sps:$4 sm:$0xff]  }
  0xce   : > { %1069 = vmatprep.mubr.bf16.mxu0 %v2203_v1 }
  0xd1   : > { %1942 = vmatmul.mubr.msk.bf16.vlgmr.msra.gmra.mxu0 %vm899_vm2, %v333_v18  ;;  %v2184_v18 = vld [vmem:[%s2939_s4 + $0xf0] ss:$12 sps:$4 sm:$0xff]  }
  0xd2   : > { %1079 = vmatprep.mubr.bf16.mxu0 %v2203_v1  ;;  %2001 = vmatpush3.bf16.msra.mxu0 %v2135_v27 }
  0xd3   : > { %2002 = vmatprep.subr.bf16.mxu0 %v2139_v34 }
  0xd6   : > { %2003 = vmatpush3.bf16.msra.mxu0 %v2143_v36 }
  0xd7   : > { %2004 = vmatprep.subr.bf16.mxu0 %v2147_v44 }
  0xd9   : > { %1943 = vmatmul.mubr.msk.bf16.gmra.mxu0 %vm899_vm2, %v336_v21  ;;  %v2187_v21 = vld [vmem:[%s2939_s4 + $0xc8] ss:$12 sps:$4 sm:$0xff]  }
  0xda   : > { %1089 = vmatprep.mubr.bf16.mxu0 %v2203_v1  ;;  %2005 = vmatpush3.bf16.msra.mxu0 %v2151_v46 }
  0xdb   : > { %2006 = vmatprep.subr.bf16.mxu0 %v2155_v53 }
  0xde   : > { %2007 = vmatpush3.bf16.msra.mxu0 %v2159_v55 }
  0xdf   : > { %2008 = vmatprep.subr.bf16.mxu0 %v2163_v62 }
  0xe1   : > { %1944 = vmatmul.mubr.msk.bf16.gmra.mxu0 %vm899_vm2, %v339_v23  ;;  %v2192_v23 = vld [vmem:[%s2939_s4 + $0xc0] ss:$12 sps:$4 sm:$0xff]  }
  0xe2   : > { %1099 = vmatprep.mubr.bf16.mxu0 %v2203_v1  ;;  %2009 = vmatpush3.bf16.msra.mxu0 %v2167_v0 }
  0xe3   : > { %2010 = vmatprep.subr.bf16.mxu0 %v2171_v9 }
  0xe6   : > { %2011 = vmatpush3.bf16.msra.mxu0 %v2175_v10 }
  0xe7   : > { %2012 = vmatprep.subr.bf16.mxu0 %v2179_v14 }
  0xe9   : > { %1945 = vmatmul.mubr.msk.bf16.gmra.mxu0 %vm899_vm2, %v342_v32 }
  0xea   : > { %1109 = vmatprep.mubr.bf16.mxu0 %v2203_v1  ;;  %2013 = vmatpush3.bf16.msra.mxu0 %v2183_v16 }
  0xeb   : > { %2014 = vmatprep.subr.bf16.mxu0 %v2187_v21 }
  0xee   : > { %2015 = vmatpush3.bf16.msra.mxu0 %v2191_v22 }
  0xf1   : > { %1946 = vmatmul.mubr.msk.bf16.gmra.mxu0 %vm899_vm2, %v345_v42 }
  0xf2   : > { %1119 = vmatprep.mubr.bf16.mxu0 %v2203_v1 }
  0xf9   : > { %1947 = vmatmul.mubr.msk.bf16.gmra.mxu0 %vm899_vm2, %v348_v51 }
  0xfa   : > { %1129 = vmatprep.mubr.bf16.mxu0 %v2203_v1 }
 0x101   : > { %1948 = vmatmul.mubr.msk.bf16.gmra.mxu0 %vm899_vm2, %v351_v60 }
 0x102   : > { %1139 = vmatprep.mubr.bf16.mxu0 %v2203_v1  ;;  %v2172_v1 = vld [vmem:[%s2939_s4 + $0x138] ss:$12 sps:$4 sm:$0xff]  }
 0x103   : > { %1556 = vmatpush2.bf16.msra.mxu1 %v2172_v1 }
 0x104   : > { %1557 = vmatprep.subr.bf16.mxu1 %v2178_v11 }
 0x107   : > { %1558 = vmatpush2.bf16.msra.mxu1 %v2176_v12 }
 0x108   : > { %1559 = vmatprep.subr.bf16.mxu1 %v2182_v13 }
 0x109   : > { %1949 = vmatmul.mubr.msk.bf16.gmra.mxu0 %vm899_vm2, %v354_v7 }
 0x10b   : > { %1560 = vmatpush2.bf16.msra.mxu1 %v2180_v15 }
 0x10c   : > { %1561 = vmatprep.subr.bf16.mxu1 %v2186_v17 }
 0x10d   : > { %v958_v24 = vpop.f32.mrf.mxu1 }
 0x10f   : > { %1562 = vmatpush2.bf16.msra.mxu1 %v2184_v18  ;;  %v960_v27 = vpop.f32.mrf.mxu1 }
 0x110   : > { %1563 = vmatprep.subr.bf16.mxu1 %v2190_v19 }
 0x111   : > { %v962_v29 = vpop.f32.mrf.mxu1 }
 0x113   : > { %1564 = vmatpush2.bf16.msra.mxu1 %v2188_v20  ;;  %v964_v32 = vpop.f32.mrf.mxu1 }
 0x114   : > { %1565 = vmatprep.subr.bf16.mxu1 %v2194_v4 }
 0x115   : > { %v968_v35 = vpop.f32.mrf.mxu1 }
 0x117   : > { %1566 = vmatpush2.bf16.msra.mxu1 %v2192_v23  ;;  %v970_v38 = vpop.f32.mrf.mxu1 }
 0x119   : > { %v972_v42 = vpop.f32.mrf.mxu1 }
 0x11b   : > { %v974_v45 = vpop.f32.mrf.mxu1 }
 0x11d   : > { %v2697_v48 = vpop.f32.mrf.mxu1 }
 0x11f   : > { %v2703_v51 = vpop.f32.mrf.mxu1 }
 0x121   : > { %v2709_v54 = vpop.f32.mrf.mxu1 }
 0x123   : > { %v2715_v57 = vpop.f32.mrf.mxu1 }
 0x125   : > { %v2721_v60 = vpop.f32.mrf.mxu1 }
 0x127   : > { %v2727_v63 = vpop.f32.mrf.mxu1 }
 0x129   : > { %v2733_v3 = vpop.f32.mrf.mxu1 }
 0x12b   : > { %v2739_v7 = vpop.f32.mrf.mxu1 }
 0x12d   : > { %v2745_v1 = vpop.f32.mrf.mxu1 }
 0x12f   : > { %v2749_v13 = vpop.f32.mrf.mxu1 }
 0x131   : > { %v2751_v4 = vpop.f32.mrf.mxu1 }
 0x151   : > { %v624_v25 = vpop.f32.mrf.mxu0 }
 0x152   : > { %v959_v12 = vadd.f32 %v958_v24, %v624_v25 }
 0x153   : > { %v626_v26 = vpop.f32.mrf.mxu0 }
 0x154   : > { %v961_v15 = vadd.f32 %v960_v27, %v626_v26 }
 0x155   : > { %v630_v28 = vpop.f32.mrf.mxu0 }
 0x156   : > { %v963_v16 = vadd.f32 %v962_v29, %v630_v28 }
 0x157   : > { %v632_v30 = vpop.f32.mrf.mxu0 }
 0x158   : > { %v965_v19 = vadd.f32 %v964_v32, %v632_v30 }
 0x159   : > { %v636_v31 = vpop.f32.mrf.mxu0 }
 0x15b   : > { %v2677_v33 = vpop.f32.mrf.mxu0 }
 0x15c   : > { %v971_v27 = vadd.f32 %v970_v38, %v2677_v33 }
 0x15d   : > { %v2679_v34 = vpop.f32.mrf.mxu0 }
 0x15e   : > { %v973_v28 = vadd.f32 %v972_v42, %v2679_v34 }
 0x15f   : > { %v2681_v36 = vpop.f32.mrf.mxu0 }
 0x161   : > { %v2683_v37 = vpop.f32.mrf.mxu0 }
 0x162   : > { %v979_v34 = vadd.f32 %v2697_v48, %v2683_v37 }
 0x163   : > { %v2685_v39 = vpop.f32.mrf.mxu0 }
 0x165   : > { %v2687_v40 = vpop.f32.mrf.mxu0 }
 0x167   : > { %v2689_v43 = vpop.f32.mrf.mxu0 }
 0x169   : > { %v2691_v44 = vpop.f32.mrf.mxu0 }
 0x16b   : > { %v2693_v46 = vpop.f32.mrf.mxu0 }
 0x16d   : > { %v2695_v47 = vpop.f32.mrf.mxu0 }
 0x16f   : > { %v2699_v49 = vpop.f32.mrf.mxu0 }
 0x171   : > { %v2701_v50 = vpop.f32.mrf.mxu0 }
 0x173   : > { %v2705_v52 = vpop.f32.mrf.mxu0 }
 0x175   : > { %v2707_v53 = vpop.f32.mrf.mxu0 }
 0x177   : > { %v2711_v55 = vpop.f32.mrf.mxu0 }
 0x179   : > { %v2713_v56 = vpop.f32.mrf.mxu0 }
 0x17b   : > { %v2717_v58 = vpop.f32.mrf.mxu0 }
 0x17d   : > { %v2719_v59 = vpop.f32.mrf.mxu0 }
 0x17f   : > { %v2723_v61 = vpop.f32.mrf.mxu0 }
 0x181   : > { %v2725_v62 = vpop.f32.mrf.mxu0 }
 0x183   : > { %v2729_v0 = vpop.f32.mrf.mxu0 }
 0x185   : > { %v2731_v2 = vpop.f32.mrf.mxu0 }
 0x187   : > { %v2735_v5 = vpop.f32.mrf.mxu0 }
 0x188   : > { %2943 = vst [vmem:[#allocation2_spill] sm:$0xff] %v2735_v5  ;;  %v2753_v5 = vpop.f32.mrf.mxu1 }
 0x189   : > { %v2737_v6 = vpop.f32.mrf.mxu0 }
 0x18a   : > { %2944 = vst [vmem:[#allocation3_spill] sm:$0xff] %v2737_v6 }
 0x18b   : > { %v2741_v8 = vpop.f32.mrf.mxu0 }
 0x18c   : > { %2945 = vst [vmem:[#allocation4_spill] sm:$0xff] %v2741_v8 }
 0x18d   : > { %v2743_v9 = vpop.f32.mrf.mxu0 }
 0x18e   : > { %2946 = vst [vmem:[#allocation5_spill] sm:$0xff] %v2743_v9 }
 0x18f   : > { %v2747_v10 = vpop.f32.mrf.mxu0 }
 0x190   : > { %2947 = vst [vmem:[#allocation6_spill] sm:$0xff] %v2747_v10  ;;  %v969_v10 = vadd.f32 %v968_v35, %v636_v31  ;;  %v2758_v31 = vpop.f32.mrf.mxu1 }
 0x191   : > { %v1071_v11 = vpop.f32.mrf.mxu0 }
 0x192   : > { %v1072_v17 = vadd.f32 %v1071_v11, %v959_v12  ;;  %v975_v11 = vadd.f32 %v974_v45, %v2681_v36  ;;  %v2762_v36 = vpop.f32.mrf.mxu1 }
 0x193   : > { %v1073_v14 = vpop.f32.mrf.mxu0 }
 0x194   : > { %v1074_v20 = vadd.f32 %v1073_v14, %v961_v15  ;;  %v1150_v23 = vmax.f32 %v1072_v17, 0.0  ;;  %v2770_v48 = vpop.f32.mrf.mxu1 }
 0x195   : > { %v1075_v18 = vpop.f32.mrf.mxu0 }
 0x196   : > { %v1076_v21 = vadd.f32 %v1075_v18, %v963_v16  ;;  %v1151_v6 = vmax.f32 %v1074_v20, 0.0 }
 0x197   : > { %v1077_v22 = vpop.f32.mrf.mxu0 }
 0x198   : > { %v1152_v41 = vmax.f32 %v1076_v21, 0.0  ;;  %v1078_v9 = vadd.f32 %v1077_v22, %v965_v19  ;;  %v985_v19 = vadd.f32 %v2715_v57, %v2689_v43  ;;  %v1014_v43 = vpop.f32.mrf.mxu1 }
 0x199   : > { %v1081_v8 = vpop.f32.mrf.mxu0 }
 0x19a   : > { %v1182_v24 = vpack.c.bf16 %v1152_v41, %v1150_v23  ;;  %v1153_v25 = vmax.f32 %v1078_v9, 0.0  ;;  %v1082_v30 = vadd.f32 %v1081_v8, %v969_v10  ;;  %v981_v8 = vadd.f32 %v2703_v51, %v2685_v39 }
 0x19b   : > { %v1083_v26 = vpop.f32.mrf.mxu0  ;;  %v983_v10 = vadd.f32 %v2709_v54, %v2687_v40  ;;  %v989_v40 = vadd.f32 %v2721_v60, %v2691_v44  ;;  %v1018_v44 = vpop.f32.mrf.mxu1 }
 0x19c   : > { %v1183_v29 = vpack.c.bf16 %v1153_v25, %v1151_v6  ;;  %v1084_v12 = vadd.f32 %v1083_v26, %v971_v27  ;;  %v1154_v35 = vmax.f32 %v1082_v30, 0.0  ;;  %v991_v26 = vadd.f32 %v2727_v63, %v2693_v46 }
 0x19d   : > { %v1085_v32 = vpop.f32.mrf.mxu0  ;;  %v993_v27 = vadd.f32 %v2733_v3, %v2695_v47  ;;  %v999_v47 = vadd.f32 %v2745_v1, %v2701_v50 }
 0x19e   : > { %v1086_v14 = vadd.f32 %v1085_v32, %v973_v28  ;;  %1567 = vmatprep.mubr.bf16.mxu1 %v1183_v29  ;;  %1680 = vmatprep.mubr.bf16.mxu0 %v1183_v29  ;;  %v1155_v38 = vmax.f32 %v1084_v12, 0.0  ;;  %v995_v32 = vadd.f32 %v2739_v7, %v2699_v49  ;;  %v1001_v7 = vadd.f32 %v2749_v13, %v2705_v52 }
 0x19f   : > { %v1087_v41 = vpop.f32.mrf.mxu0  ;;  %1568 = vmatmul.mubr.bf16.vlgmr.msra.gmra.mxu1 %v1182_v24  ;;  %1681 = vmatmul.mubr.bf16.vlgmr.msra.gmra.mxu0 %v1182_v24 }
 0x1a0   : > { %v1156_v9 = vmax.f32 %v1086_v14, 0.0  ;;  %v1088_v15 = vadd.f32 %v1087_v41, %v975_v11 }
 0x1a1   : > { %v1091_v33 = vpop.f32.mrf.mxu0 }
 0x1a2   : > { %v1184_v42 = vpack.c.bf16 %v1156_v9, %v1154_v35  ;;  %v1157_v6 = vmax.f32 %v1088_v15, 0.0  ;;  %v1092_v17 = vadd.f32 %v1091_v33, %v979_v34  ;;  %v1020_v15 = vpop.f32.mrf.mxu1  ;;  %v1003_v33 = vadd.f32 %v2751_v4, %v2707_v53 }
 0x1a3   : > { %v1093_v45 = vpop.f32.mrf.mxu0  ;;  %v1009_v53 = vadd.f32 %v2758_v31, %v2713_v56 }
 0x1a4   : > { %v1185_v16 = vpack.c.bf16 %v1157_v6, %v1155_v38  ;;  %v1094_v20 = vadd.f32 %v1093_v45, %v981_v8  ;;  %v1158_v22 = vmax.f32 %v1092_v17, 0.0  ;;  %v1005_v6 = vadd.f32 %v2753_v5, %v2711_v55  ;;  %v1022_v50 = vpop.f32.mrf.mxu1 }
 0x1a5   : > { %v1095_v18 = vpop.f32.mrf.mxu0  ;;  %v1011_v5 = vadd.f32 %v2762_v36, %v2717_v58  ;;  %v1019_v36 = vadd.f32 %v1018_v44, %v2725_v62 }
 0x1a6   : > { %v1096_v37 = vadd.f32 %v1095_v18, %v983_v10  ;;  %1577 = vmatprep.mubr.bf16.mxu1 %v1185_v16  ;;  %1688 = vmatprep.mubr.bf16.mxu0 %v1185_v16  ;;  %v1159_v54 = vmax.f32 %v1094_v20, 0.0  ;;  %v1013_v20 = vadd.f32 %v2770_v48, %v2719_v59 }
 0x1a7   : > { %v1097_v21 = vpop.f32.mrf.mxu0  ;;  %1578 = vmatmul.mubr.bf16.gmra.mxu1 %v1184_v42  ;;  %1689 = vmatmul.mubr.bf16.gmra.mxu0 %v1184_v42 }
 0x1a8   : > { %v1160_v39 = vmax.f32 %v1096_v37, 0.0  ;;  %v1098_v51 = vadd.f32 %v1097_v21, %v985_v19  ;;  %v1024_v19 = vpop.f32.mrf.mxu1 }
 0x1a9   : > { %v1101_v23 = vpop.f32.mrf.mxu0 }
 0x1aa   : > { %v1186_v24 = vpack.c.bf16 %v1160_v39, %v1158_v22  ;;  %v1161_v25 = vmax.f32 %v1098_v51, 0.0  ;;  %v1102_v29 = vadd.f32 %v1101_v23, %v989_v40  ;;  %v1015_v39 = vadd.f32 %v1014_v43, %v2723_v61  ;;  %v1028_v56 = vpop.f32.mrf.mxu1 }
 0x1ab   : > { %v1103_v57 = vpop.f32.mrf.mxu0  ;;  %v1021_v61 = vadd.f32 %v1020_v15, %v2729_v0  ;;  %v1023_v43 = vadd.f32 %v1022_v50, %v2731_v2  ;;  %v2949_v0 = vld [vmem:[#allocation3_spill] sm:$0xff]  ;;  %v2950_v15 = vld [vmem:[#allocation4_spill] sm:$0xff] }
 0x1ac   : > { %v1187_v28 = vpack.c.bf16 %v1161_v25, %v1159_v54  ;;  %v1104_v11 = vadd.f32 %v1103_v57, %v991_v26  ;;  %v1162_v14 = vmax.f32 %v1102_v29, 0.0  ;;  %v1030_v57 = vpop.f32.mrf.mxu1 }
 0x1ad   : > { %v1105_v30 = vpop.f32.mrf.mxu0 }
 0x1ae   : > { %v1106_v12 = vadd.f32 %v1105_v30, %v993_v27  ;;  %1587 = vmatprep.mubr.bf16.mxu1 %v1187_v28  ;;  %1696 = vmatprep.mubr.bf16.mxu0 %v1187_v28  ;;  %v1163_v3 = vmax.f32 %v1104_v11, 0.0  ;;  %v2948_v30 = vld [vmem:[#allocation2_spill] sm:$0xff] }
 0x1af   : > { %v1107_v60 = vpop.f32.mrf.mxu0  ;;  %1588 = vmatmul.mubr.bf16.gmra.mxu1 %v1186_v24  ;;  %1697 = vmatmul.mubr.bf16.gmra.mxu0 %v1186_v24 }
 0x1b0   : > { %v1164_v41 = vmax.f32 %v1106_v12, 0.0  ;;  %v1108_v46 = vadd.f32 %v1107_v60, %v995_v32  ;;  %v1025_v32 = vadd.f32 %v1024_v19, %v2948_v30  ;;  %v1032_v60 = vpop.f32.mrf.mxu1 }
 0x1b1   : > { %v1111_v63 = vpop.f32.mrf.mxu0 }
 0x1b2   : > { %v1188_v35 = vpack.c.bf16 %v1164_v41, %v1162_v14  ;;  %v1165_v9 = vmax.f32 %v1108_v46, 0.0  ;;  %v1112_v38 = vadd.f32 %v1111_v63, %v999_v47  ;;  %v1029_v63 = vadd.f32 %v1028_v56, %v2949_v0 }
 0x1b3   : > { %v1113_v49 = vpop.f32.mrf.mxu0 }
 0x1b4   : > { %v1189_v34 = vpack.c.bf16 %v1165_v9, %v1163_v3  ;;  %v1114_v45 = vadd.f32 %v1113_v49, %v1001_v7  ;;  %v1166_v10 = vmax.f32 %v1112_v38, 0.0  ;;  %v1031_v49 = vadd.f32 %v1030_v57, %v2950_v15  ;;  %v2951_v7 = vld [vmem:[#allocation5_spill] sm:$0xff] }
 0x1b5   : > { %v1115_v42 = vpop.f32.mrf.mxu0 }
 0x1b6   : > { %v1116_v8 = vadd.f32 %v1115_v42, %v1003_v33  ;;  %1597 = vmatprep.mubr.bf16.mxu1 %v1189_v34  ;;  %1704 = vmatprep.mubr.bf16.mxu0 %v1189_v34  ;;  %v1167_v4 = vmax.f32 %v1114_v45, 0.0  ;;  %v1033_v33 = vadd.f32 %v1032_v60, %v2951_v7 }
 0x1b7   : > { %v1117_v1 = vpop.f32.mrf.mxu0  ;;  %1598 = vmatmul.mubr.bf16.gmra.mxu1 %v1188_v35  ;;  %1705 = vmatmul.mubr.bf16.gmra.mxu0 %v1188_v35  ;;  %v1034_v35 = vpop.f32.mrf.mxu1 }
 0x1b8   : > { %v1168_v16 = vmax.f32 %v1116_v8, 0.0  ;;  %v1118_v52 = vadd.f32 %v1117_v1, %v1005_v6  ;;  %v2952_v6 = vld [vmem:[#allocation6_spill] sm:$0xff] }
 0x1b9   : > { %v1121_v13 = vpop.f32.mrf.mxu0  ;;  %v1035_v45 = vadd.f32 %v1034_v35, %v2952_v6 }
 0x1ba   : > { %v1190_v17 = vpack.c.bf16 %v1168_v16, %v1166_v10  ;;  %v1169_v18 = vmax.f32 %v1118_v52, 0.0  ;;  %v1122_v21 = vadd.f32 %v1121_v13, %v1009_v53 }
 0x1bb   : > { %v1123_v55 = vpop.f32.mrf.mxu0 }
 0x1bc   : > { %v1191_v37 = vpack.c.bf16 %v1169_v18, %v1167_v4  ;;  %v1124_v51 = vadd.f32 %v1123_v55, %v1011_v5  ;;  %v1170_v40 = vmax.f32 %v1122_v21, 0.0  ;;  %v2953_v18 = vlaneseq  ;;  %v1262_v5 = vld [vmem:[%s2940_s5] sm:$0x7] }
 0x1bd   : > { %v1125_v22 = vpop.f32.mrf.mxu0 }
 0x1be   : > { %v1126_v23 = vadd.f32 %v1125_v22, %v1013_v20  ;;  %1607 = vmatprep.mubr.bf16.mxu1 %v1191_v37  ;;  %1712 = vmatprep.mubr.bf16.mxu0 %v1191_v37  ;;  %v1171_v59 = vmax.f32 %v1124_v51, 0.0  ;;  %v1265_v19 = vshrl.u32 %v2953_v18, 7 }
 0x1bf   : > { %v1127_v31 = vpop.f32.mrf.mxu0  ;;  %1608 = vmatmul.mubr.bf16.gmra.mxu1 %v1190_v17  ;;  %1713 = vmatmul.mubr.bf16.gmra.mxu0 %v1190_v17 }
 0x1c0   : > { %v1172_v54 = vmax.f32 %v1126_v23, 0.0  ;;  %v1128_v24 = vadd.f32 %v1127_v31, %v1015_v39  ;;  %v1266_v55 = vsub.s32 0, %v1265_v19  ;;  %v1270_v20 = vsub.s32 1, %v1265_v19 }
 0x1c1   : > { %v1131_v58 = vpop.f32.mrf.mxu0  ;;  %v1274_v21 = vsub.s32 2, %v1265_v19 }
 0x1c2   : > { %v1192_v48 = vpack.c.bf16 %v1172_v54, %v1170_v40  ;;  %v1173_v25 = vmax.f32 %v1128_v24, 0.0  ;;  %v1132_v28 = vadd.f32 %v1131_v58, %v1019_v36  ;;  %v2807_v37 = vrot.slane %v1262_v5, %v1266_v55 }
 0x1c3   : > { %v1133_v26 = vpop.f32.mrf.mxu0  ;;  %v2809_v22 = vrot.slane %v1262_v5, %v1270_v20  ;;  %v2819_v56 = vrot.slane %v1262_v5, %v1274_v21 }
 0x1c4   : > { %v1193_v27 = vpack.c.bf16 %v1173_v25, %v1171_v59  ;;  %v1134_v11 = vadd.f32 %v1133_v26, %v1021_v61  ;;  %v1174_v44 = vmax.f32 %v1132_v28, 0.0 }
 0x1c5   : > { %v1135_v29 = vpop.f32.mrf.mxu0 }
 0x1c6   : > { %v1136_v12 = vadd.f32 %v1135_v29, %v1023_v43  ;;  %1617 = vmatprep.mubr.bf16.mxu1 %v1193_v27  ;;  %1720 = vmatprep.mubr.bf16.mxu0 %v1193_v27  ;;  %v1175_v2 = vmax.f32 %v1134_v11, 0.0 }
 0x1c7   : > { %v1137_v62 = vpop.f32.mrf.mxu0  ;;  %1618 = vmatmul.mubr.bf16.gmra.mxu1 %v1192_v48  ;;  %1721 = vmatmul.mubr.bf16.gmra.mxu0 %v1192_v48 }
 0x1c8   : > { %v1176_v14 = vmax.f32 %v1136_v12, 0.0  ;;  %v1138_v41 = vadd.f32 %v1137_v62, %v1025_v32 }
 0x1c9   : > { %v1141_v46 = vpop.f32.mrf.mxu0 }
 0x1ca   : > { %v1194_v47 = vpack.c.bf16 %v1176_v14, %v1174_v44  ;;  %v1177_v3 = vmax.f32 %v1138_v41, 0.0  ;;  %v1142_v38 = vadd.f32 %v1141_v46, %v1029_v63 }
 0x1cb   : > { %v1143_v9 = vpop.f32.mrf.mxu0 }
 0x1cc   : > { %v1195_v34 = vpack.c.bf16 %v1177_v3, %v1175_v2  ;;  %v1144_v8 = vadd.f32 %v1143_v9, %v1031_v49  ;;  %v1178_v10 = vmax.f32 %v1142_v38, 0.0 }
 0x1cd   : > { %v1145_v42 = vpop.f32.mrf.mxu0 }
 0x1ce   : > { %v1146_v50 = vadd.f32 %v1145_v42, %v1033_v33  ;;  %1627 = vmatprep.mubr.bf16.mxu1 %v1195_v34  ;;  %1728 = vmatprep.mubr.bf16.mxu0 %v1195_v34  ;;  %v1179_v13 = vmax.f32 %v1144_v8, 0.0 }
 0x1cf   : > { %v1147_v1 = vpop.f32.mrf.mxu0  ;;  %1628 = vmatmul.mubr.bf16.gmra.mxu1 %v1194_v47  ;;  %1729 = vmatmul.mubr.bf16.gmra.mxu0 %v1194_v47 }
 0x1d0   : > { %v1180_v16 = vmax.f32 %v1146_v50, 0.0  ;;  %v1148_v52 = vadd.f32 %v1147_v1, %v1035_v45 }
 0x1d2   : > { %v1196_v53 = vpack.c.bf16 %v1180_v16, %v1178_v10  ;;  %v1181_v4 = vmax.f32 %v1148_v52, 0.0 }
 0x1d4   : > { %v1197_v17 = vpack.c.bf16 %v1181_v4, %v1179_v13 }
 0x1d6   : > { %1637 = vmatprep.mubr.bf16.mxu1 %v1197_v17  ;;  %1736 = vmatprep.mubr.bf16.mxu0 %v1197_v17 }
 0x1d7   : > { %1638 = vmatmul.mubr.bf16.gmra.mxu1 %v1196_v53  ;;  %1737 = vmatmul.mubr.bf16.gmra.mxu0 %v1196_v53 }
 0x25f   : > { %v1569_v39 = vpop.f32.mrf.mxu1  ;;  %v2016_v51 = vpop.f32.mrf.mxu0 }
 0x260   : > { %v1570_v23 = vadd.f32 %v1569_v39, %v2807_v37 }
 0x261   : > { %v1571_v31 = vpop.f32.mrf.mxu1  ;;  %v2017_v40 = vpop.f32.mrf.mxu0 }
 0x262   : > { %1745 = vst [vmem:[%s2816_s27] sm:$0xff] %v1570_v23  ;;  %v1572_v54 = vadd.f32 %v1571_v31, %v2809_v22  ;;  %v2018_v24 = vadd.f32 %v2017_v40, %v2016_v51 }
 0x263   : > { %v1573_v58 = vpop.f32.mrf.mxu1  ;;  %v2019_v36 = vpop.f32.mrf.mxu0 }
 0x264   : > { %1746 = vst [vmem:[%s2816_s27 + $0x8] sm:$0xff] %v1572_v54  ;;  %v1683_v59 = vadd.f32 %v2018_v24, %v2819_v56  ;;  %v1574_v48 = vadd.f32 %v1573_v58, %v2807_v37 }
 0x265   : > { %v1575_v25 = vpop.f32.mrf.mxu1  ;;  %v2020_v57 = vpop.f32.mrf.mxu0 }
 0x266   : > { %1747 = vst.msk [vmem:[%s2816_s27 + $0x10] sm:$0xff] %vm899_vm2, %v1683_v59  ;;  %1748 = vst [vmem:[%s2816_s27 + $0x18] sm:$0xff] %v1574_v48  ;;  %v1576_v26 = vadd.f32 %v1575_v25, %v2809_v22  ;;  %v2021_v61 = vadd.f32 %v2020_v57, %v2019_v36 }
 0x267   : > { %v1579_v43 = vpop.f32.mrf.mxu1  ;;  %v2022_v27 = vpop.f32.mrf.mxu0 }
 0x268   : > { %1749 = vst [vmem:[%s2816_s27 + $0x20] sm:$0xff] %v1576_v26  ;;  %v1686_v28 = vadd.f32 %v2021_v61, %v2819_v56  ;;  %v1580_v29 = vadd.f32 %v1579_v43, %v2807_v37 }
 0x269   : > { %v1581_v30 = vpop.f32.mrf.mxu1  ;;  %v2023_v32 = vpop.f32.mrf.mxu0 }
 0x26a   : > { %1750 = vst.msk [vmem:[%s2816_s27 + $0x28] sm:$0xff] %vm899_vm2, %v1686_v28  ;;  %1751 = vst [vmem:[%s2816_s27 + $0x30] sm:$0xff] %v1580_v29  ;;  %v1582_v11 = vadd.f32 %v1581_v30, %v2809_v22  ;;  %v2024_v12 = vadd.f32 %v2023_v32, %v2022_v27 }
 0x26b   : > { %v1583_v60 = vpop.f32.mrf.mxu1  ;;  %v2025_v62 = vpop.f32.mrf.mxu0 }
 0x26c   : > { %1752 = vst [vmem:[%s2816_s27 + $0x38] sm:$0xff] %v1582_v11  ;;  %v1691_v44 = vadd.f32 %v2024_v12, %v2819_v56  ;;  %v1584_v14 = vadd.f32 %v1583_v60, %v2807_v37 }
 0x26d   : > { %v1585_v41 = vpop.f32.mrf.mxu1  ;;  %v2026_v46 = vpop.f32.mrf.mxu0 }
 0x26e   : > { %1753 = vst.msk [vmem:[%s2816_s27 + $0x40] sm:$0xff] %vm899_vm2, %v1691_v44  ;;  %1754 = vst [vmem:[%s2816_s27 + $0x48] sm:$0xff] %v1584_v14  ;;  %v1586_v0 = vadd.f32 %v1585_v41, %v2809_v22  ;;  %v2027_v63 = vadd.f32 %v2026_v46, %v2025_v62 }
 0x26f   : > { %v1589_v2 = vpop.f32.mrf.mxu1  ;;  %v2028_v47 = vpop.f32.mrf.mxu0 }
 0x270   : > { %1755 = vst [vmem:[%s2816_s27 + $0x50] sm:$0xff] %v1586_v0  ;;  %v1694_v3 = vadd.f32 %v2027_v63, %v2819_v56  ;;  %v1590_v35 = vadd.f32 %v1589_v2, %v2807_v37 }
 0x271   : > { %v1591_v9 = vpop.f32.mrf.mxu1  ;;  %v2029_v15 = vpop.f32.mrf.mxu0 }
 0x272   : > { %1756 = vst.msk [vmem:[%s2816_s27 + $0x58] sm:$0xff] %vm899_vm2, %v1694_v3  ;;  %1757 = vst [vmem:[%s2816_s27 + $0x60] sm:$0xff] %v1590_v35  ;;  %v1592_v49 = vadd.f32 %v1591_v9, %v2809_v22  ;;  %v2030_v7 = vadd.f32 %v2029_v15, %v2028_v47 }
 0x273   : > { %v1593_v33 = vpop.f32.mrf.mxu1  ;;  %v2031_v34 = vpop.f32.mrf.mxu0 }
 0x274   : > { %1758 = vst [vmem:[%s2816_s27 + $0x68] sm:$0xff] %v1592_v49  ;;  %v1699_v38 = vadd.f32 %v2030_v7, %v2819_v56  ;;  %v1594_v42 = vadd.f32 %v1593_v33, %v2807_v37 }
 0x275   : > { %v1595_v6 = vpop.f32.mrf.mxu1  ;;  %v2032_v45 = vpop.f32.mrf.mxu0 }
 0x276   : > { %1759 = vst.msk [vmem:[%s2816_s27 + $0x70] sm:$0xff] %vm899_vm2, %v1699_v38  ;;  %1760 = vst [vmem:[%s2816_s27 + $0x78] sm:$0xff] %v1594_v42  ;;  %v1596_v8 = vadd.f32 %v1595_v6, %v2809_v22  ;;  %v2033_v50 = vadd.f32 %v2032_v45, %v2031_v34 }
 0x277   : > { %v1599_v1 = vpop.f32.mrf.mxu1  ;;  %v2034_v10 = vpop.f32.mrf.mxu0 }
 0x278   : > { %1761 = vst [vmem:[%s2816_s27 + $0x80] sm:$0xff] %v1596_v8  ;;  %v1702_v16 = vadd.f32 %v2033_v50, %v2819_v56  ;;  %v1600_v52 = vadd.f32 %v1599_v1, %v2807_v37 }
 0x279   : > { %v1601_v13 = vpop.f32.mrf.mxu1  ;;  %v2035_v53 = vpop.f32.mrf.mxu0 }
 0x27a   : > { %1762 = vst.msk [vmem:[%s2816_s27 + $0x88] sm:$0xff] %vm899_vm2, %v1702_v16  ;;  %1763 = vst [vmem:[%s2816_s27 + $0x90] sm:$0xff] %v1600_v52  ;;  %v1602_v4 = vadd.f32 %v1601_v13, %v2809_v22  ;;  %v2036_v17 = vadd.f32 %v2035_v53, %v2034_v10 }
 0x27b   : > { %v1603_v18 = vpop.f32.mrf.mxu1  ;;  %v2037_v19 = vpop.f32.mrf.mxu0 }
 0x27c   : > { %1764 = vst [vmem:[%s2816_s27 + $0x98] sm:$0xff] %v1602_v4  ;;  %v1707_v55 = vadd.f32 %v2036_v17, %v2819_v56  ;;  %v1604_v5 = vadd.f32 %v1603_v18, %v2807_v37 }
 0x27d   : > { %v1605_v20 = vpop.f32.mrf.mxu1  ;;  %v2038_v21 = vpop.f32.mrf.mxu0 }
 0x27e   : > { %1765 = vst.msk [vmem:[%s2816_s27 + $0xa0] sm:$0xff] %vm899_vm2, %v1707_v55  ;;  %1766 = vst [vmem:[%s2816_s27 + $0xa8] sm:$0xff] %v1604_v5  ;;  %v1606_v39 = vadd.f32 %v1605_v20, %v2809_v22  ;;  %v2039_v51 = vadd.f32 %v2038_v21, %v2037_v19 }
 0x27f   : > { %v1609_v23 = vpop.f32.mrf.mxu1  ;;  %v2040_v31 = vpop.f32.mrf.mxu0 }
 0x280   : > { %1767 = vst [vmem:[%s2816_s27 + $0xb0] sm:$0xff] %v1606_v39  ;;  %v1710_v40 = vadd.f32 %v2039_v51, %v2819_v56  ;;  %v1610_v54 = vadd.f32 %v1609_v23, %v2807_v37 }
 0x281   : > { %v1611_v24 = vpop.f32.mrf.mxu1  ;;  %v2041_v58 = vpop.f32.mrf.mxu0 }
 0x282   : > { %1768 = vst.msk [vmem:[%s2816_s27 + $0xb8] sm:$0xff] %vm899_vm2, %v1710_v40  ;;  %1769 = vst [vmem:[%s2816_s27 + $0xc0] sm:$0xff] %v1610_v54  ;;  %v1612_v36 = vadd.f32 %v1611_v24, %v2809_v22  ;;  %v2042_v59 = vadd.f32 %v2041_v58, %v2040_v31 }
 0x283   : > { %v1613_v48 = vpop.f32.mrf.mxu1  ;;  %v2043_v25 = vpop.f32.mrf.mxu0 }
 0x284   : > { %1770 = vst [vmem:[%s2816_s27 + $0xc8] sm:$0xff] %v1612_v36  ;;  %v1715_v57 = vadd.f32 %v2042_v59, %v2819_v56  ;;  %v1614_v26 = vadd.f32 %v1613_v48, %v2807_v37 }
 0x285   : > { %v1615_v61 = vpop.f32.mrf.mxu1  ;;  %v2044_v43 = vpop.f32.mrf.mxu0 }
 0x286   : > { %1771 = vst.msk [vmem:[%s2816_s27 + $0xd0] sm:$0xff] %vm899_vm2, %v1715_v57  ;;  %1772 = vst [vmem:[%s2816_s27 + $0xd8] sm:$0xff] %v1614_v26  ;;  %v1616_v27 = vadd.f32 %v1615_v61, %v2809_v22  ;;  %v2045_v28 = vadd.f32 %v2044_v43, %v2043_v25 }
 0x287   : > { %v1619_v29 = vpop.f32.mrf.mxu1  ;;  %v2046_v30 = vpop.f32.mrf.mxu0 }
 0x288   : > { %1773 = vst [vmem:[%s2816_s27 + $0xe0] sm:$0xff] %v1616_v27  ;;  %v1718_v32 = vadd.f32 %v2045_v28, %v2819_v56  ;;  %v1620_v11 = vadd.f32 %v1619_v29, %v2807_v37 }
 0x289   : > { %v1621_v12 = vpop.f32.mrf.mxu1  ;;  %v2047_v60 = vpop.f32.mrf.mxu0 }
 0x28a   : > { %1774 = vst.msk [vmem:[%s2816_s27 + $0xe8] sm:$0xff] %vm899_vm2, %v1718_v32  ;;  %1775 = vst [vmem:[%s2816_s27 + $0xf0] sm:$0xff] %v1620_v11  ;;  %v1622_v62 = vadd.f32 %v1621_v12, %v2809_v22  ;;  %v2048_v44 = vadd.f32 %v2047_v60, %v2046_v30 }
 0x28b   : > { %v1623_v14 = vpop.f32.mrf.mxu1  ;;  %v2049_v41 = vpop.f32.mrf.mxu0 }
 0x28c   : > { %1776 = vst [vmem:[%s2816_s27 + $0xf8] sm:$0xff] %v1622_v62  ;;  %v1723_v46 = vadd.f32 %v2048_v44, %v2819_v56  ;;  %v1624_v0 = vadd.f32 %v1623_v14, %v2807_v37 }
 0x28d   : > { %v1625_v63 = vpop.f32.mrf.mxu1  ;;  %v2050_v2 = vpop.f32.mrf.mxu0 }
 0x28e   : > { %1777 = vst.msk [vmem:[%s2816_s27 + $0x100] sm:$0xff] %vm899_vm2, %v1723_v46  ;;  %1778 = vst [vmem:[%s2816_s27 + $0x108] sm:$0xff] %v1624_v0  ;;  %v1626_v47 = vadd.f32 %v1625_v63, %v2809_v22  ;;  %v2051_v3 = vadd.f32 %v2050_v2, %v2049_v41 }
 0x28f   : > { %v1629_v35 = vpop.f32.mrf.mxu1  ;;  %v2052_v9 = vpop.f32.mrf.mxu0 }
 0x290   : > { %1779 = vst [vmem:[%s2816_s27 + $0x110] sm:$0xff] %v1626_v47  ;;  %v1726_v15 = vadd.f32 %v2051_v3, %v2819_v56  ;;  %v1630_v49 = vadd.f32 %v1629_v35, %v2807_v37 }
 0x291   : > { %v1631_v7 = vpop.f32.mrf.mxu1  ;;  %v2053_v33 = vpop.f32.mrf.mxu0 }
 0x292   : > { %1780 = vst.msk [vmem:[%s2816_s27 + $0x118] sm:$0xff] %vm899_vm2, %v1726_v15  ;;  %1781 = vst [vmem:[%s2816_s27 + $0x120] sm:$0xff] %v1630_v49  ;;  %v1632_v34 = vadd.f32 %v1631_v7, %v2809_v22  ;;  %v2054_v38 = vadd.f32 %v2053_v33, %v2052_v9 }
 0x293   : > { %v1633_v42 = vpop.f32.mrf.mxu1  ;;  %v2055_v6 = vpop.f32.mrf.mxu0 }
 0x294   : > { %1782 = vst [vmem:[%s2816_s27 + $0x128] sm:$0xff] %v1632_v34  ;;  %v1731_v45 = vadd.f32 %v2054_v38, %v2819_v56  ;;  %v1634_v8 = vadd.f32 %v1633_v42, %v2807_v37 }
 0x295   : > { %v1635_v50 = vpop.f32.mrf.mxu1  ;;  %v2056_v1 = vpop.f32.mrf.mxu0 }
 0x296   : > { %1783 = vst.msk [vmem:[%s2816_s27 + $0x130] sm:$0xff] %vm899_vm2, %v1731_v45  ;;  %1784 = vst [vmem:[%s2816_s27 + $0x138] sm:$0xff] %v1634_v8  ;;  %v1636_v10 = vadd.f32 %v1635_v50, %v2809_v22  ;;  %v2057_v16 = vadd.f32 %v2056_v1, %v2055_v6 }
 0x297   : > { %v1639_v52 = vpop.f32.mrf.mxu1  ;;  %v2058_v13 = vpop.f32.mrf.mxu0 }
 0x298   : > { %1785 = vst [vmem:[%s2816_s27 + $0x140] sm:$0xff] %v1636_v10  ;;  %v1734_v53 = vadd.f32 %v2057_v16, %v2819_v56  ;;  %v1640_v4 = vadd.f32 %v1639_v52, %v2807_v37 }
 0x299   : > { %v1641_v17 = vpop.f32.mrf.mxu1  ;;  %v2059_v18 = vpop.f32.mrf.mxu0 }
 0x29a   : > { %1786 = vst.msk [vmem:[%s2816_s27 + $0x148] sm:$0xff] %vm899_vm2, %v1734_v53  ;;  %1787 = vst [vmem:[%s2816_s27 + $0x150] sm:$0xff] %v1640_v4  ;;  %v1642_v19 = vadd.f32 %v1641_v17, %v2809_v22  ;;  %v2060_v55 = vadd.f32 %v2059_v18, %v2058_v13 }
 0x29b   : > { %v1643_v5 = vpop.f32.mrf.mxu1  ;;  %v2061_v20 = vpop.f32.mrf.mxu0 }
 0x29c   : > { %1788 = vst [vmem:[%s2816_s27 + $0x158] sm:$0xff] %v1642_v19  ;;  %v1739_v21 = vadd.f32 %v2060_v55, %v2819_v56  ;;  %v1644_v39 = vadd.f32 %v1643_v5, %v2807_v37 }
 0x29d   : > { %v1645_v51 = vpop.f32.mrf.mxu1  ;;  %v2062_v23 = vpop.f32.mrf.mxu0 }
 0x29e   : > { %1789 = vst.msk [vmem:[%s2816_s27 + $0x160] sm:$0xff] %vm899_vm2, %v1739_v21  ;;  %1790 = vst [vmem:[%s2816_s27 + $0x168] sm:$0xff] %v1644_v39  ;;  %v1646_v31 = vadd.f32 %v1645_v51, %v2809_v22  ;;  %v2063_v40 = vadd.f32 %v2062_v23, %v2061_v20 }
 0x2a0   : > { %1791 = vst [vmem:[%s2816_s27 + $0x170] sm:$0xff] %v1646_v31  ;;  %v1742_v54 = vadd.f32 %v2063_v40, %v2819_v56 }
 0x2a2   : > { %1792 = vst.msk [vmem:[%s2816_s27 + $0x178] sm:$0xff] %vm899_vm2, %v1742_v54 }
 0x2a3 PF: > { %s16_s21 = sadd.s32 1, %s2201_s21  }
 0x2a4   : > { %p13_p4 = scmp.ge.s32.totalorder %s16_s21, 4  }
 0x2a6   :  { %15 = sbr.rel (!%p13_p4) target bundleno = 1 (0x1), region = 77 }

</bundles_post_ra>
